<compile_context>
chip_gen: v6e
topology: v6e:2x2x1
jax: 0.10.0
libtpu: 0.0.40
codegen_flags: <defaults>
</compile_context>

<pallas_src>
import math

import jax
import jax.numpy as jnp
from jax.experimental import pallas as pl
from jax.experimental.pallas import tpu as pltpu


# ----------------------------- Pallas kernel -----------------------------

def _label_encoder_kernel(x_ref, a_ref, w1_ref, b1_ref, w2_ref, b2_ref, o_ref):
    """Fused LabelEncoder forward.

    conv1 (GCN) + eval-BatchNorm (folded into W1/b1) + tanh + conv2 (GCN).
    Dropout is identity in eval mode.
    """
    x = x_ref[...]
    a = a_ref[...]

    # GCNConv1: A_hat @ (x @ W1') + b1'   (BN scale/shift pre-folded into W1'/b1')
    xw = jnp.dot(x, w1_ref[...], preferred_element_type=jnp.float32)
    h = jnp.dot(a, xw, preferred_element_type=jnp.float32) + b1_ref[...]

    # features == 'biobert' branch: BatchNorm (already folded) then tanh
    h = jnp.tanh(h)

    # GCNConv2: A_hat @ (h @ W2) + b2
    hw = jnp.dot(h, w2_ref[...], preferred_element_type=jnp.float32)
    out = jnp.dot(a, hw, preferred_element_type=jnp.float32) + b2_ref[...]
    o_ref[...] = out.astype(o_ref.dtype)


# ----------------------------- wrapper -----------------------------

def label_encoder_forward(x, a_hat, params):
    """Single fused pallas_call; every operand is one whole-array VMEM block."""
    N = x.shape[0]
    d_out = params["w2"].shape[1]
    args = (x, a_hat, params["w1f"], params["b1f"], params["w2"], params["b2"])
    vmem_spec = pl.BlockSpec(memory_space=pltpu.MemorySpace.VMEM)
    return pl.pallas_call(
        _label_encoder_kernel,
        out_shape=jax.ShapeDtypeStruct((N, d_out), jnp.float32),
        in_specs=[vmem_spec] * len(args),
        out_specs=vmem_spec,
    )(*args)


# ----------------------------- graph preprocessing -----------------------------

def gcn_norm_dense(edge_index, num_nodes):
    """Cached GCN normalization (GCNConv cached=True): dense D^-1/2 (A+I) D^-1/2.

    Pure static index/scatter preprocessing -> plain-JAX glue outside the kernel.
    """
    src, dst = edge_index
    a = jnp.zeros((num_nodes, num_nodes), jnp.float32)
    a = a.at[dst, src].set(1.0)                    # message flow: source -> target
    loops = jnp.arange(num_nodes)
    a = a.at[loops, loops].set(1.0)                # add self-loops
    deg = jnp.sum(a, axis=1)
    dinv = jax.lax.rsqrt(jnp.maximum(deg, 1.0))
    return a * dinv[:, None] * dinv[None, :]


# ----------------------------- parameter init -----------------------------

def _glorot(key, d_in, d_out):
    lim = math.sqrt(6.0 / (d_in + d_out))
    return jax.random.uniform(key, (d_in, d_out), jnp.float32, -lim, lim)


def init_label_encoder(key, in_ch, out_ch):
    hid = 2 * out_ch
    k1, k2, k3, k4, k5, k6, k7, k8 = jax.random.split(key, 8)

    # GCNConv weights / biases
    w1 = _glorot(k1, in_ch, hid)
    b1 = 0.1 * jax.random.normal(k2, (1, hid), jnp.float32)
    w2 = _glorot(k3, hid, out_ch)
    b2 = 0.1 * jax.random.normal(k4, (1, out_ch), jnp.float32)

    # BatchNorm1d(2*out_ch), eval-mode running stats + affine ("trained" values)
    gamma = 1.0 + 0.1 * jax.random.normal(k5, (1, hid), jnp.float32)
    beta = 0.1 * jax.random.normal(k6, (1, hid), jnp.float32)
    rmean = 0.1 * jax.random.normal(k7, (1, hid), jnp.float32)
    rvar = 1.0 + 0.5 * jax.random.uniform(k8, (1, hid), jnp.float32)

    # Fold eval-mode BN into conv1 weights (per-output-column affine is exact):
    #   BN(A(xW1)+b1) = A(x(W1*scale)) + (b1 - rmean)*scale + beta
    scale = gamma * jax.lax.rsqrt(rvar + 1e-5)
    w1f = w1 * scale
    b1f = (b1 - rmean) * scale + beta

    raw = dict(w1=w1, b1=b1, gamma=gamma, beta=beta, rmean=rmean, rvar=rvar,
               w2=w2, b2=b2)
    fused = dict(w1f=w1f, b1f=b1f, w2=w2, b2=b2)
    return fused, raw


# ----------------------------- plain-JAX reference -----------------------------

def reference_forward(x, a_hat, raw):
    h = a_hat @ (x @ raw["w1"]) + raw["b1"]
    h = (h - raw["rmean"]) * jax.lax.rsqrt(raw["rvar"] + 1e-5) * raw["gamma"] + raw["beta"]
    h = jnp.tanh(h)
    return a_hat @ (h @ raw["w2"]) + raw["b2"]


# ----------------------------- main -----------------------------

if __name__ == "__main__":
    key = jax.random.PRNGKey(0)
    kgraph, kparam, kx = jax.random.split(key, 3)

    # small, lane/sublane-friendly synthetic config
    N = 64         # number of label/graph nodes (multiple of 8 sublanes)
    IN_CH = 128    # label-feature dim (biobert stand-in, lane aligned)
    OUT_CH = 32    # out_channels -> conv1 width 64, final width 32

    # deterministic undirected graph: ring + 32 random chords (both directions)
    ring_src = jnp.arange(N, dtype=jnp.int32)
    ring_dst = (ring_src + 1) % N
    ks, kd = jax.random.split(kgraph)
    cs = jax.random.randint(ks, (32,), 0, N, dtype=jnp.int32)
    cd = (cs + 1 + jax.random.randint(kd, (32,), 0, N - 1, dtype=jnp.int32)) % N
    src = jnp.concatenate([ring_src, ring_dst, cs, cd])
    dst = jnp.concatenate([ring_dst, ring_src, cd, cs])
    edge_index = jnp.stack([src, dst])            # (2, 192)

    a_hat = gcn_norm_dense(edge_index, N)          # cached normalized adjacency
    params, raw = init_label_encoder(kparam, IN_CH, OUT_CH)
    x = jax.random.normal(kx, (N, IN_CH), jnp.float32)

    # TODO(synk): nn.Dropout and training-mode BatchNorm statistics are not
    # implemented (eval-mode semantics: dropout = identity, BN = running stats).
    out = label_encoder_forward(x, a_hat, params)
    jax.block_until_ready(out)

    assert out.shape == (N, OUT_CH)
    ref = reference_forward(x, a_hat, raw)
    assert jnp.allclose(out, ref, rtol=5e-3, atol=5e-3), "mismatch vs reference"
    print("KERNEL_OK")
</pallas_src>

<mosaic_0001>
module attributes {stable_mosaic.version = 11 : i64} {
  func.func @_label_encoder_kernel(%arg0: memref<64x128xf32, #tpu.memory_space<vmem>>, %arg1: memref<64x64xf32, #tpu.memory_space<vmem>>, %arg2: memref<128x64xf32, #tpu.memory_space<vmem>>, %arg3: memref<1x64xf32, #tpu.memory_space<vmem>>, %arg4: memref<64x32xf32, #tpu.memory_space<vmem>>, %arg5: memref<1x32xf32, #tpu.memory_space<vmem>>, %arg6: memref<64x32xf32, #tpu.memory_space<vmem>>) attributes {dimension_semantics = [], scalar_prefetch = 0 : i64, scratch_operands = 0 : i64, tpu.core_type = #tpu.core_type<tc>} {
    %c0 = arith.constant 0 : index
    %c0_0 = arith.constant 0 : index
    %0 = vector.load %arg0[%c0, %c0_0] : memref<64x128xf32, #tpu.memory_space<vmem>>, vector<64x128xf32>
    %c0_1 = arith.constant 0 : index
    %c0_2 = arith.constant 0 : index
    %1 = vector.load %arg1[%c0_1, %c0_2] : memref<64x64xf32, #tpu.memory_space<vmem>>, vector<64x64xf32>
    %c0_3 = arith.constant 0 : index
    %c0_4 = arith.constant 0 : index
    %2 = vector.load %arg2[%c0_3, %c0_4] : memref<128x64xf32, #tpu.memory_space<vmem>>, vector<128x64xf32>
    %cst = arith.constant dense<0.000000e+00> : vector<64x64xf32>
    %3 = tpu.matmul %0, %2, %cst {dimension_numbers = #tpu.dot_dimension_numbers<[1], [0], [0], [1], [0, 0, 1, 1], [], []>} : vector<64x128xf32>, vector<128x64xf32>, vector<64x64xf32> -> vector<64x64xf32>
    %cst_5 = arith.constant dense<0.000000e+00> : vector<64x64xf32>
    %4 = tpu.matmul %1, %3, %cst_5 {dimension_numbers = #tpu.dot_dimension_numbers<[1], [0], [0], [1], [0, 0, 1, 1], [], []>} : vector<64x64xf32>, vector<64x64xf32>, vector<64x64xf32> -> vector<64x64xf32>
    %c0_6 = arith.constant 0 : index
    %c0_7 = arith.constant 0 : index
    %5 = vector.load %arg3[%c0_6, %c0_7] : memref<1x64xf32, #tpu.memory_space<vmem>>, vector<1x64xf32>
    %6 = vector.broadcast %5 : vector<1x64xf32> to vector<64x64xf32>
    %7 = arith.addf %4, %6 : vector<64x64xf32>
    %8 = math.tanh %7 : vector<64x64xf32>
    %c0_8 = arith.constant 0 : index
    %c0_9 = arith.constant 0 : index
    %9 = vector.load %arg4[%c0_8, %c0_9] : memref<64x32xf32, #tpu.memory_space<vmem>>, vector<64x32xf32>
    %cst_10 = arith.constant dense<0.000000e+00> : vector<64x32xf32>
    %10 = tpu.matmul %8, %9, %cst_10 {dimension_numbers = #tpu.dot_dimension_numbers<[1], [0], [0], [1], [0, 0, 1, 1], [], []>} : vector<64x64xf32>, vector<64x32xf32>, vector<64x32xf32> -> vector<64x32xf32>
    %cst_11 = arith.constant dense<0.000000e+00> : vector<64x32xf32>
    %11 = tpu.matmul %1, %10, %cst_11 {dimension_numbers = #tpu.dot_dimension_numbers<[1], [0], [0], [1], [0, 0, 1, 1], [], []>} : vector<64x64xf32>, vector<64x32xf32>, vector<64x32xf32> -> vector<64x32xf32>
    %c0_12 = arith.constant 0 : index
    %c0_13 = arith.constant 0 : index
    %12 = vector.load %arg5[%c0_12, %c0_13] : memref<1x32xf32, #tpu.memory_space<vmem>>, vector<1x32xf32>
    %13 = vector.broadcast %12 : vector<1x32xf32> to vector<64x32xf32>
    %14 = arith.addf %11, %13 : vector<64x32xf32>
    %c0_14 = arith.constant 0 : index
    %c0_15 = arith.constant 0 : index
    %15 = vector.load %arg6[%c0_14, %c0_15] : memref<64x32xf32, #tpu.memory_space<vmem>>, vector<64x32xf32>
    tpu.vector_store %arg6[%c0_14, %c0_15], %14 {strides = array<i32>} : memref<64x32xf32, #tpu.memory_space<vmem>>, vector<64x32xf32>,
    return
  }
}

</mosaic_0001>

<bundles_post_ra>
// kernel: tpu_custom_call.1
= control target key start
LH: loop header
LB: loop body
LE: loop exit
PB: predicated region body
PF: predicated region fallthrough
CT: control target
= control target key end

     0   :  { %vm167_vm0 = vcmask 523264   ;;  %vm554_vm1 = vcmask 261120   ;;  %s1070_s2 = inlined_call_operand.vmem [shape: f32[128,64], index: 2, kind: input, shape index: {}]   ;;  %s1071_s0 = inlined_call_operand.vmem [shape: f32[64,128], index: 0, kind: input, shape index: {}]   ;;  %s1072_s1 = inlined_call_operand.vmem [shape: f32[64,64], index: 1, kind: input, shape index: {}]   ;;  %s1073_s4 = inlined_call_operand.vmem [shape: f32[64,32], index: 4, kind: input, shape index: {}]   ;;  %s1074_s3 = inlined_call_operand.vmem [shape: f32[1,64], index: 3, kind: input, shape index: {}]   ;;  %s1075_s5 = inlined_call_operand.vmem [shape: f32[1,32], index: 5, kind: input, shape index: {}]   ;;  %s1076_s6 = inlined_call_operand.vmem [shape: f32[64,32], index: 6, kind: output, shape index: {}]  }
   0x1   :  { %v54_v0 = vld [vmem:[%s1070_s2 + $0x78] sm:$0xff]  ;;  %v53_v1 = vld [vmem:[%s1070_s2 + $0x70] sm:$0xff]  ;;  %v52_v2 = vld [vmem:[%s1070_s2 + $0x68] sm:$0xff] }
   0x2   :  { %665 = vmatprep.subr.mxu0 %v54_v0  ;;  %v51_v3 = vld [vmem:[%s1070_s2 + $0x60] sm:$0xff]  ;;  %v50_v5 = vld [vmem:[%s1070_s2 + $0x58] sm:$0xff]  ;;  %v49_v6 = vld [vmem:[%s1070_s2 + $0x50] sm:$0xff] }
   0x3   :  { %666 = vmatpush3.msra.mxu0 %v54_v0  ;;  %v23_v4 = vld [vmem:[%s1071_s0] sm:$0xff]  ;;  %v48_v7 = vld [vmem:[%s1070_s2 + $0x48] sm:$0xff]  ;;  %v46_v9 = vld [vmem:[%s1070_s2 + $0x38] sm:$0xff] }
   0x4   :  { %667 = vmatprep.subr.mxu0 %v53_v1  ;;  %697 = vmatprep.mubr.f32.mxu0 %v23_v4  ;;  %v47_v8 = vld [vmem:[%s1070_s2 + $0x40] sm:$0xff]  ;;  %v45_v10 = vld [vmem:[%s1070_s2 + $0x30] sm:$0xff]  ;;  %v44_v11 = vld [vmem:[%s1070_s2 + $0x28] sm:$0xff] }
   0x5   :  { %668 = vmatpush3.msra.mxu0 %v53_v1  ;;  %v43_v12 = vld [vmem:[%s1070_s2 + $0x20] sm:$0xff]  ;;  %v42_v13 = vld [vmem:[%s1070_s2 + $0x18] sm:$0xff]  ;;  %v41_v14 = vld [vmem:[%s1070_s2 + $0x10] sm:$0xff] }
   0x6   :  { %669 = vmatprep.subr.mxu0 %v52_v2  ;;  %v40_v15 = vld [vmem:[%s1070_s2 + $0x8] sm:$0xff]  ;;  %v39_v16 = vld [vmem:[%s1070_s2] sm:$0xff]  ;;  %v25_v18 = vld [vmem:[%s1071_s0 + $0x10] sm:$0xff] }
   0x7   :  { %670 = vmatpush3.msra.mxu0 %v52_v2  ;;  %v24_v17 = vld [vmem:[%s1071_s0 + $0x8] sm:$0xff]  ;;  %v26_v19 = vld [vmem:[%s1071_s0 + $0x18] sm:$0xff]  ;;  %v27_v20 = vld [vmem:[%s1071_s0 + $0x20] sm:$0xff] }
   0x8   :  { %671 = vmatprep.subr.mxu0 %v51_v3  ;;  %v28_v21 = vld [vmem:[%s1071_s0 + $0x28] sm:$0xff]  ;;  %v29_v22 = vld [vmem:[%s1071_s0 + $0x30] sm:$0xff]  ;;  %v30_v23 = vld [vmem:[%s1071_s0 + $0x38] sm:$0xff] }
   0x9   :  { %672 = vmatpush3.msra.mxu0 %v51_v3  ;;  %v31_v24 = vld [vmem:[%s1072_s1] sm:$0xff]  ;;  %v940_v33 = vld [vmem:[%s1072_s1 + $0x8] sm:$0xff]  ;;  %v945_v34 = vld [vmem:[%s1072_s1 + $0x10] sm:$0xff] }
   0xa   :  { %673 = vmatprep.subr.mxu0 %v50_v5  ;;  %725 = vmatprep.mubr.msk.f32.mxu1 %vm167_vm0, %v31_v24  ;;  %v954_v35 = vld [vmem:[%s1072_s1 + $0x18] sm:$0xff]  ;;  %v959_v36 = vld [vmem:[%s1072_s1 + $0x20] sm:$0xff]  ;;  %v968_v37 = vld [vmem:[%s1072_s1 + $0x28] sm:$0xff] }
   0xb   :  { %674 = vmatpush3.msra.mxu0 %v50_v5  ;;  %v973_v38 = vld [vmem:[%s1072_s1 + $0x30] sm:$0xff]  ;;  %v982_v39 = vld [vmem:[%s1072_s1 + $0x38] sm:$0xff]  ;;  %v310_v42 = vld [vmem:[%s1073_s4 + $0x28] sm:$0xff] }
   0xc   :  { %675 = vmatprep.subr.mxu0 %v49_v6  ;;  %v312_v40 = vld [vmem:[%s1073_s4 + $0x38] sm:$0xff]  ;;  %v311_v41 = vld [vmem:[%s1073_s4 + $0x30] sm:$0xff]  ;;  %v309_v43 = vld [vmem:[%s1073_s4 + $0x20] sm:$0xff] }
   0xd   :  { %676 = vmatpush3.msra.mxu0 %v49_v6  ;;  %v308_v44 = vld [vmem:[%s1073_s4 + $0x18] sm:$0xff]  ;;  %v307_v45 = vld [vmem:[%s1073_s4 + $0x10] sm:$0xff]  ;;  %v306_v46 = vld [vmem:[%s1073_s4 + $0x8] sm:$0xff] }
   0xe   :  { %677 = vmatprep.subr.mxu0 %v48_v7  ;;  %v305_v47 = vld [vmem:[%s1073_s4] sm:$0xff] }
   0xf   :  { %678 = vmatpush3.msra.mxu0 %v48_v7  ;;  %v567_v48 = vld [vmem:[%s1074_s3] ss:$0 sm:$0xff] }
  0x10   :  { %679 = vmatprep.subr.mxu0 %v47_v8 }
  0x11   :  { %680 = vmatpush3.msra.mxu0 %v47_v8 }
  0x12   :  { %681 = vmatprep.subr.mxu0 %v46_v9 }
  0x13   :  { %682 = vmatpush3.msra.mxu0 %v46_v9 }
  0x14   :  { %683 = vmatprep.subr.mxu0 %v45_v10 }
  0x15   :  { %684 = vmatpush3.msra.mxu0 %v45_v10 }
  0x16   :  { %685 = vmatprep.subr.mxu0 %v44_v11 }
  0x17   :  { %686 = vmatpush3.msra.mxu0 %v44_v11 }
  0x18   :  { %687 = vmatprep.subr.mxu0 %v43_v12 }
  0x19   :  { %688 = vmatpush3.msra.mxu0 %v43_v12 }
  0x1a   :  { %689 = vmatprep.subr.mxu0 %v42_v13 }
  0x1b   :  { %690 = vmatpush3.msra.mxu0 %v42_v13 }
  0x1c   :  { %691 = vmatprep.subr.mxu0 %v41_v14 }
  0x1d   :  { %692 = vmatpush3.msra.mxu0 %v41_v14 }
  0x1e   :  { %693 = vmatprep.subr.mxu0 %v40_v15 }
  0x1f   :  { %694 = vmatpush3.msra.mxu0 %v40_v15 }
  0x20   :  { %695 = vmatprep.subr.mxu0 %v39_v16 }
  0x21   :  { %696 = vmatpush3.msra.mxu0 %v39_v16 }
  0x22   :  { %698 = vmatmul.mubr.f32.vlgmr.msra.gmra.mxu0 %v24_v17  ;;  %v584_v17 = vld [vmem:[%s1075_s5] ss:$0 sm:$0xff] }
  0x23   :  { %700 = vmatprep.mubr.f32.mxu0 %v25_v18 }
  0x26   :  { %701 = vmatmul.mubr.f32.gmra.mxu0 %v26_v19 }
  0x27   :  { %703 = vmatprep.mubr.f32.mxu0 %v27_v20 }
  0x2a   :  { %704 = vmatmul.mubr.f32.gmra.mxu0 %v28_v21 }
  0x2b   :  { %706 = vmatprep.mubr.f32.mxu0 %v29_v22 }
  0x2e   :  { %707 = vmatmul.mubr.f32.gmra.mxu0 %v30_v23 }
  0x2f   :  { %781 = vmatprep.mubr.msk.f32.mxu0 %vm167_vm0, %v31_v24 }
  0xe2   :  { %v699_v25 = vpop.f32.mrf.mxu0 }
  0xe4   :  { %v121_v26 = vpop.f32.mrf.mxu0 }
  0xe6   :  { %v702_v27 = vpop.f32.mrf.mxu0 }
  0xe8   :  { %v131_v28 = vpop.f32.mrf.mxu0 }
  0xea   :  { %v705_v29 = vpop.f32.mrf.mxu0 }
  0xec   :  { %v141_v30 = vpop.f32.mrf.mxu0 }
  0xee   :  { %v708_v31 = vpop.f32.mrf.mxu0 }
  0xef   :  { %709 = vmatprep.subr.mxu1 %v708_v31 }
  0xf0   :  { %v151_v32 = vpop.f32.mrf.mxu0  ;;  %710 = vmatpush3.msra.mxu1 %v708_v31 }
  0xf1   :  { %711 = vmatprep.subr.mxu1 %v151_v32 }
  0xf2   :  { %712 = vmatpush3.msra.mxu1 %v151_v32 }
  0xf3   :  { %713 = vmatprep.subr.mxu1 %v705_v29 }
  0xf4   :  { %714 = vmatpush3.msra.mxu1 %v705_v29 }
  0xf5   :  { %715 = vmatprep.subr.mxu1 %v141_v30 }
  0xf6   :  { %716 = vmatpush3.msra.mxu1 %v141_v30 }
  0xf7   :  { %717 = vmatprep.subr.mxu1 %v702_v27 }
  0xf8   :  { %718 = vmatpush3.msra.mxu1 %v702_v27 }
  0xf9   :  { %719 = vmatprep.subr.mxu1 %v131_v28 }
  0xfa   :  { %720 = vmatpush3.msra.mxu1 %v131_v28 }
  0xfb   :  { %721 = vmatprep.subr.mxu1 %v699_v25 }
  0xfc   :  { %722 = vmatpush3.msra.mxu1 %v699_v25 }
  0xfd   :  { %723 = vmatprep.subr.mxu1 %v121_v26 }
  0xfe   :  { %724 = vmatpush3.msra.mxu1 %v121_v26 }
  0xff   :  { %726 = vmatmul.mubr.msk.f32.vlgmr.msra.gmra.mxu1 %vm167_vm0, %v940_v33  ;;  %737 = vmatprep.subr.mxu1 %v312_v40 }
 0x100   :  { %728 = vmatprep.mubr.msk.f32.mxu1 %vm167_vm0, %v945_v34  ;;  %738 = vmatpush3.msra.mxu1 %v312_v40 }
 0x101   :  { %739 = vmatprep.subr.mxu1 %v311_v41 }
 0x102   :  { %740 = vmatpush3.msra.mxu1 %v311_v41 }
 0x103   :  { %729 = vmatmul.mubr.msk.f32.gmra.mxu1 %vm167_vm0, %v954_v35  ;;  %741 = vmatprep.subr.mxu1 %v310_v42 }
 0x104   :  { %731 = vmatprep.mubr.msk.f32.mxu1 %vm167_vm0, %v959_v36  ;;  %742 = vmatpush3.msra.mxu1 %v310_v42 }
 0x105   :  { %743 = vmatprep.subr.mxu1 %v309_v43 }
 0x106   :  { %744 = vmatpush3.msra.mxu1 %v309_v43 }
 0x107   :  { %732 = vmatmul.mubr.msk.f32.gmra.mxu1 %vm167_vm0, %v968_v37  ;;  %745 = vmatprep.subr.mxu1 %v308_v44 }
 0x108   :  { %734 = vmatprep.mubr.msk.f32.mxu1 %vm167_vm0, %v973_v38  ;;  %746 = vmatpush3.msra.mxu1 %v308_v44 }
 0x109   :  { %747 = vmatprep.subr.mxu1 %v307_v45 }
 0x10a   :  { %748 = vmatpush3.msra.mxu1 %v307_v45 }
 0x10b   :  { %735 = vmatmul.mubr.msk.f32.gmra.mxu1 %vm167_vm0, %v982_v39  ;;  %749 = vmatprep.subr.mxu1 %v306_v46 }
 0x10c   :  { %750 = vmatpush3.msra.mxu1 %v306_v46 }
 0x10d   :  { %751 = vmatprep.subr.mxu1 %v305_v47 }
 0x10e   :  { %752 = vmatpush3.msra.mxu1 %v305_v47 }
 0x1bf   :  { %v727_v49 = vpop.f32.mrf.mxu1 }
 0x1c0   :  { %v264_v50 = vadd.f32 %v727_v49, %v567_v48 }
 0x1c1   :  { %v258_v51 = vpop.f32.mrf.mxu1 }
 0x1c2   :  { %v259_v52 = vadd.f32 %v567_v48, %v258_v51 }
 0x1c3   :  { %v730_v53 = vpop.f32.mrf.mxu1 }
 0x1c4   :  { %809 = vtanh.f32 %v259_v52  ;;  %v274_v54 = vadd.f32 %v730_v53, %v567_v48 }
 0x1c5   :  { %811 = vtanh.f32 %v264_v50  ;;  %v268_v55 = vpop.f32.mrf.mxu1 }
 0x1c6   :  { %v269_v56 = vadd.f32 %v567_v48, %v268_v55 }
 0x1c7   :  { %v733_v57 = vpop.f32.mrf.mxu1 }
 0x1c8   :  { %813 = vtanh.f32 %v269_v56  ;;  %v284_v58 = vadd.f32 %v733_v57, %v567_v48 }
 0x1c9   :  { %815 = vtanh.f32 %v274_v54  ;;  %v278_v59 = vpop.f32.mrf.mxu1 }
 0x1ca   :  { %v279_v60 = vadd.f32 %v567_v48, %v278_v59 }
 0x1cb   :  { %v736_v61 = vpop.f32.mrf.mxu1 }
 0x1cc   :  { %817 = vtanh.f32 %v279_v60  ;;  %v294_v62 = vadd.f32 %v736_v61, %v567_v48 }
 0x1cd   :  { %819 = vtanh.f32 %v284_v58  ;;  %v288_v63 = vpop.f32.mrf.mxu1 }
 0x1ce   :  { %v289_v0 = vadd.f32 %v567_v48, %v288_v63 }
 0x1d0   :  { %821 = vtanh.f32 %v289_v0 }
 0x1d1   :  { %v810_v1 = vpop.eup %809  ;;  %823 = vtanh.f32 %v294_v62 }
 0x1d2   :  { %v812_v2 = vpop.eup %811  ;;  %753 = vmatprep.mubr.msk.f32.mxu1 %vm167_vm0, %v810_v1 }
 0x1d3   :  { %754 = vmatmul.mubr.msk.f32.vlgmr.msra.gmra.mxu1 %vm167_vm0, %v812_v2 }
 0x1d5   :  { %v814_v3 = vpop.eup %813 }
 0x1d6   :  { %v816_v4 = vpop.eup %815  ;;  %756 = vmatprep.mubr.msk.f32.mxu1 %vm167_vm0, %v814_v3 }
 0x1d7   :  { %757 = vmatmul.mubr.msk.f32.gmra.mxu1 %vm167_vm0, %v816_v4 }
 0x1d9   :  { %v818_v5 = vpop.eup %817 }
 0x1da   :  { %v820_v6 = vpop.eup %819  ;;  %759 = vmatprep.mubr.msk.f32.mxu1 %vm167_vm0, %v818_v5 }
 0x1db   :  { %760 = vmatmul.mubr.msk.f32.gmra.mxu1 %vm167_vm0, %v820_v6 }
 0x1dd   :  { %v822_v7 = vpop.eup %821 }
 0x1de   :  { %v824_v8 = vpop.eup %823  ;;  %762 = vmatprep.mubr.msk.f32.mxu1 %vm167_vm0, %v822_v7 }
 0x1df   :  { %763 = vmatmul.mubr.msk.f32.gmra.mxu1 %vm167_vm0, %v824_v8 }
 0x1e0   :  { %787 = vmatprep.mubr.msk.f32.mxu1 %vm167_vm0, %v959_v36 }
 0x293   :  { %v755_v9 = vpop.f32.mrf.mxu1 }
 0x295   :  { %v403_v10 = vpop.f32.mrf.mxu1 }
 0x297   :  { %v758_v11 = vpop.f32.mrf.mxu1 }
 0x299   :  { %v413_v12 = vpop.f32.mrf.mxu1 }
 0x29b   :  { %v761_v13 = vpop.f32.mrf.mxu1 }
 0x29d   :  { %v423_v14 = vpop.f32.mrf.mxu1 }
 0x29f   :  { %v764_v15 = vpop.f32.mrf.mxu1 }
 0x2a0   :  { %765 = vmatprep.subr.mxu0 %v764_v15  ;;  %793 = vmatprep.subr.mxu1 %v764_v15 }
 0x2a1   :  { %v433_v16 = vpop.f32.mrf.mxu1  ;;  %766 = vmatpush3.msra.mxu0 %v764_v15  ;;  %801 = vmatpush3.msra.mxu1 %v764_v15 }
 0x2a2   :  { %767 = vmatprep.subr.mxu0 %v433_v16  ;;  %794 = vmatprep.subr.mxu1 %v433_v16 }
 0x2a3   :  { %768 = vmatpush3.msra.mxu0 %v433_v16  ;;  %802 = vmatpush3.msra.mxu1 %v433_v16 }
 0x2a4   :  { %769 = vmatprep.subr.mxu0 %v761_v13  ;;  %795 = vmatprep.subr.mxu1 %v761_v13 }
 0x2a5   :  { %770 = vmatpush3.msra.mxu0 %v761_v13  ;;  %803 = vmatpush3.msra.mxu1 %v761_v13 }
 0x2a6   :  { %771 = vmatprep.subr.mxu0 %v423_v14  ;;  %796 = vmatprep.subr.mxu1 %v423_v14 }
 0x2a7   :  { %772 = vmatpush3.msra.mxu0 %v423_v14  ;;  %804 = vmatpush3.msra.mxu1 %v423_v14 }
 0x2a8   :  { %773 = vmatprep.subr.mxu0 %v758_v11  ;;  %797 = vmatprep.subr.mxu1 %v758_v11 }
 0x2a9   :  { %774 = vmatpush3.msra.mxu0 %v758_v11  ;;  %805 = vmatpush3.msra.mxu1 %v758_v11 }
 0x2aa   :  { %775 = vmatprep.subr.mxu0 %v413_v12  ;;  %798 = vmatprep.subr.mxu1 %v413_v12 }
 0x2ab   :  { %776 = vmatpush3.msra.mxu0 %v413_v12  ;;  %806 = vmatpush3.msra.mxu1 %v413_v12 }
 0x2ac   :  { %777 = vmatprep.subr.mxu0 %v755_v9  ;;  %799 = vmatprep.subr.mxu1 %v755_v9 }
 0x2ad   :  { %778 = vmatpush3.msra.mxu0 %v755_v9  ;;  %807 = vmatpush3.msra.mxu1 %v755_v9 }
 0x2ae   :  { %779 = vmatprep.subr.mxu0 %v403_v10  ;;  %800 = vmatprep.subr.mxu1 %v403_v10 }
 0x2af   :  { %780 = vmatpush3.msra.mxu0 %v403_v10  ;;  %808 = vmatpush3.msra.mxu1 %v403_v10 }
 0x2b0   :  { %782 = vmatmul.mubr.msk.f32.vlgmr.msra.gmra.mxu0 %vm167_vm0, %v940_v33  ;;  %788 = vmatmul.mubr.msk.f32.vlgmr.msra.gmra.mxu1 %vm167_vm0, %v968_v37 }
 0x2b1   :  { %784 = vmatprep.mubr.msk.f32.mxu0 %vm167_vm0, %v945_v34  ;;  %790 = vmatprep.mubr.msk.f32.mxu1 %vm167_vm0, %v973_v38 }
 0x2b4   :  { %785 = vmatmul.mubr.msk.f32.gmra.mxu0 %vm167_vm0, %v954_v35  ;;  %791 = vmatmul.mubr.msk.f32.gmra.mxu1 %vm167_vm0, %v982_v39 }
 0x370   :  { %v783_v18 = vpop.f32.mrf.mxu0  ;;  %v789_v19 = vpop.f32.mrf.mxu1 }
 0x371   :  { %v521_v20 = vadd.f32 %v783_v18, %v584_v17  ;;  %v541_v21 = vadd.f32 %v789_v19, %v584_v17 }
 0x372   :  { %v515_v22 = vpop.f32.mrf.mxu0  ;;  %v535_v23 = vpop.f32.mrf.mxu1 }
 0x373   :  { %556 = vst.msk [vmem:[%s1076_s6 + $0x8] sm:$0xff] %vm554_vm1, %v521_v20  ;;  %560 = vst.msk [vmem:[%s1076_s6 + $0x28] sm:$0xff] %vm554_vm1, %v541_v21  ;;  %v516_v24 = vadd.f32 %v584_v17, %v515_v22  ;;  %v536_v25 = vadd.f32 %v584_v17, %v535_v23 }
 0x374   :  { %v786_v26 = vpop.f32.mrf.mxu0  ;;  %v792_v27 = vpop.f32.mrf.mxu1 }
 0x375   :  { %555 = vst.msk [vmem:[%s1076_s6] sm:$0xff] %vm554_vm1, %v516_v24  ;;  %559 = vst.msk [vmem:[%s1076_s6 + $0x20] sm:$0xff] %vm554_vm1, %v536_v25  ;;  %v531_v28 = vadd.f32 %v786_v26, %v584_v17  ;;  %v551_v29 = vadd.f32 %v792_v27, %v584_v17 }
 0x376   :  { %v525_v30 = vpop.f32.mrf.mxu0  ;;  %v545_v31 = vpop.f32.mrf.mxu1 }
 0x377   :  { %558 = vst.msk [vmem:[%s1076_s6 + $0x18] sm:$0xff] %vm554_vm1, %v531_v28  ;;  %562 = vst.msk [vmem:[%s1076_s6 + $0x38] sm:$0xff] %vm554_vm1, %v551_v29  ;;  %v526_v32 = vadd.f32 %v584_v17, %v525_v30  ;;  %v546_v33 = vadd.f32 %v584_v17, %v545_v31 }
 0x379   :  { %557 = vst.msk [vmem:[%s1076_s6 + $0x10] sm:$0xff] %vm554_vm1, %v526_v32  ;;  %561 = vst.msk [vmem:[%s1076_s6 + $0x30] sm:$0xff] %vm554_vm1, %v546_v33 }

</bundles_post_ra>
